<compile_context>
chip_gen: v7x
topology: tpu7x:2x2x1
jax: 0.10.0
libtpu: 0.0.40
codegen_flags: <defaults>
</compile_context>

<pallas_src>
import jax
import jax.numpy as jnp
from jax.experimental import pallas as pl
from jax.experimental.pallas import tpu as pltpu

EPS = 1e-5      # nn.BatchNorm2d default eps
TILE_M = 256    # rows per grid step (multiple of 16)


# ----------------------------- Pallas kernels ------------------------------ #

def _stats(y_f32):
    """Per-channel (sum, sum-of-squares) of an f32 tile -> (2, Cpad)."""
    return jnp.concatenate([jnp.sum(y_f32, axis=0, keepdims=True),
                            jnp.sum(y_f32 * y_f32, axis=0, keepdims=True)],
                           axis=0)


def _pass1_kernel(p_ref, w_ref, y_ref, st_ref):
    """GEMM y = patches @ W (bf16 in, f32 acc) + per-tile channel stats."""
    y = jnp.dot(p_ref[...], w_ref[...], preferred_element_type=jnp.float32)
    y_ref[...] = y.astype(y_ref.dtype)
    st_ref[0] = _stats(y)


def _pass1_dual_kernel(p1_ref, w1_ref, ps_ref, ws_ref,
                       y1_ref, st1_ref, ys_ref, sts_ref):
    """conv1 GEMM + stats, fused with the projection-shortcut GEMM + stats."""
    y1 = jnp.dot(p1_ref[...], w1_ref[...], preferred_element_type=jnp.float32)
    y1_ref[...] = y1.astype(y1_ref.dtype)
    st1_ref[0] = _stats(y1)
    ys = jnp.dot(ps_ref[...], ws_ref[...], preferred_element_type=jnp.float32)
    ys_ref[...] = ys
    sts_ref[0] = _stats(ys)


def _bn_relu_kernel(y_ref, ss_ref, o_ref):
    """out1 = relu(y1 * scale + shift), stored bf16 for the next GEMM."""
    a = y_ref[...].astype(jnp.float32) * ss_ref[0:1, :] + ss_ref[1:2, :]
    o_ref[...] = jnp.maximum(a, 0.0).astype(o_ref.dtype)


def _final_identity_kernel(y_ref, ss_ref, r_ref, o_ref):
    """out = relu(y2*scale2 + shift2 + x)   (identity shortcut)."""
    a = y_ref[...] * ss_ref[0:1, :] + ss_ref[1:2, :] + r_ref[...]
    o_ref[...] = jnp.maximum(a, 0.0).astype(o_ref.dtype)


def _final_projection_kernel(y_ref, ss_ref, ys_ref, sss_ref, o_ref):
    """out = relu(y2*scale2 + shift2 + ys*scale_s + shift_s)."""
    a = (y_ref[...] * ss_ref[0:1, :] + ss_ref[1:2, :]
         + ys_ref[...] * sss_ref[0:1, :] + sss_ref[1:2, :])
    o_ref[...] = jnp.maximum(a, 0.0).astype(o_ref.dtype)


# ------------------------------- JAX glue ----------------------------------- #

def _round_up(v, m):
    return (v + m - 1) // m * m


def _pad2(a, rows, cols, dtype):
    r, c = a.shape
    return jnp.pad(a, ((0, rows - r), (0, cols - c))).astype(dtype)


def _pad_vec(v, cols):
    return jnp.pad(v, (0, cols - v.shape[0])).astype(jnp.float32)


def _im2col(x_nhwc, k, stride, pad):
    """(N,H,W,C) -> (N*Ho*Wo, k*k*C); tap order (kh, kw, cin)."""
    n, h, w, c = x_nhwc.shape
    xp = jnp.pad(x_nhwc, ((0, 0), (pad, pad), (pad, pad), (0, 0)))
    ho = (h + 2 * pad - k) // stride + 1
    wo = (w + 2 * pad - k) // stride + 1
    cols = []
    for kh in range(k):
        for kw in range(k):
            cols.append(
                xp[:, kh:kh + stride * (ho - 1) + 1:stride,
                      kw:kw + stride * (wo - 1) + 1:stride, :])
    patches = jnp.concatenate(cols, axis=-1)              # (N, Ho, Wo, k*k*C)
    return patches.reshape(n * ho * wo, k * k * c), ho, wo


def _finalize_scale_shift(partial, m_true, gamma_p, beta_p):
    """Tiny cross-tile reduction; folds gamma/beta into packed (scale, shift)."""
    tot = jnp.sum(partial, axis=0)                         # (2, Cpad)
    mean = tot[0] / m_true
    var = jnp.maximum(tot[1] / m_true - mean * mean, 0.0)  # guard cancellation
    scale = gamma_p * jax.lax.rsqrt(var + EPS)
    shift = beta_p - mean * scale
    return jnp.stack([scale, shift], axis=0)               # (2, Cpad)


def init_basic_block_params(key, in_channel, out_channel):
    """Deterministic synthetic params.  Conv weights live in GEMM layout
    (kh*kw*Cin, Cout) with row order (kh, kw, cin) matching _im2col.
    Conv biases are omitted: with batch-statistics BatchNorm right after each
    conv, a per-channel bias is exactly cancelled by the mean subtraction."""
    keys = jax.random.split(key, 3)
    p = {
        "w1": 0.1 * jax.random.normal(keys[0], (3, 3, in_channel, out_channel),
                                      jnp.float32).reshape(9 * in_channel, out_channel),
        "g1": jnp.ones((out_channel,), jnp.float32),
        "be1": jnp.zeros((out_channel,), jnp.float32),
        "w2": 0.1 * jax.random.normal(keys[1], (3, 3, out_channel, out_channel),
                                      jnp.float32).reshape(9 * out_channel, out_channel),
        "g2": jnp.ones((out_channel,), jnp.float32),
        "be2": jnp.zeros((out_channel,), jnp.float32),
    }
    if in_channel != out_channel:
        # shortcut: 1x1 stride-2 conv + BN
        p["ws"] = 0.1 * jax.random.normal(keys[2], (in_channel, out_channel),
                                          jnp.float32)
        p["gs"] = jnp.ones((out_channel,), jnp.float32)
        p["bes"] = jnp.zeros((out_channel,), jnp.float32)
    return p


def basic_block_forward(x_nchw, params, in_channel, out_channel):
    """Forward pass of BasicBlock.  Input/output are NCHW like PyTorch."""
    x = jnp.transpose(x_nchw, (0, 2, 3, 1)).astype(jnp.float32)   # NHWC
    n = x.shape[0]
    projection = in_channel != out_channel
    stride1 = 2 if projection else 1
    c_pad = _round_up(out_channel, 128)

    # --- conv1 im2col (JAX gather) ---
    p1, ho, wo = _im2col(x, 3, stride1, 1)
    m_true = n * ho * wo
    tile_m = min(TILE_M, _round_up(m_true, 16))
    m_pad = _round_up(m_true, tile_m)
    n_tiles = m_pad // tile_m

    k1_pad = _round_up(9 * in_channel, 128)
    p1p = _pad2(p1, m_pad, k1_pad, jnp.bfloat16)
    w1p = _pad2(params["w1"], k1_pad, c_pad, jnp.bfloat16)

    tile_spec = pl.BlockSpec((tile_m, c_pad), lambda i: (i, 0))
    stat_spec = pl.BlockSpec((1, 2, c_pad), lambda i: (i, 0, 0))
    vec_spec = pl.BlockSpec((2, c_pad), lambda i: (0, 0))
    parallel = pltpu.CompilerParams(dimension_semantics=("parallel",))
    F32, BF16 = 4, 2

    # --- call 1: conv1 GEMM + stats (projection shortcut GEMM fused in) ---
    if projection:
        ps = x[:, ::2, ::2, :].reshape(m_true, in_channel)  # 1x1, stride 2
        ks_pad = _round_up(in_channel, 128)
        psp = _pad2(ps, m_pad, ks_pad, jnp.bfloat16)
        wsp = _pad2(params["ws"], ks_pad, c_pad, jnp.bfloat16)

        y1, st1, ys, sts = pl.pallas_call(
            _pass1_dual_kernel,
            grid=(n_tiles,),
            in_specs=[pl.BlockSpec((tile_m, k1_pad), lambda i: (i, 0)),
                      pl.BlockSpec((k1_pad, c_pad), lambda i: (0, 0)),
                      pl.BlockSpec((tile_m, ks_pad), lambda i: (i, 0)),
                      pl.BlockSpec((ks_pad, c_pad), lambda i: (0, 0))],
            out_specs=(tile_spec, stat_spec, tile_spec, stat_spec),
            out_shape=(jax.ShapeDtypeStruct((m_pad, c_pad), jnp.bfloat16),
                       jax.ShapeDtypeStruct((n_tiles, 2, c_pad), jnp.float32),
                       jax.ShapeDtypeStruct((m_pad, c_pad), jnp.float32),
                       jax.ShapeDtypeStruct((n_tiles, 2, c_pad), jnp.float32)),
            compiler_params=parallel,
            cost_estimate=pl.CostEstimate(
                flops=2 * m_pad * (k1_pad + ks_pad) * c_pad,
                transcendentals=0,
                bytes_accessed=(m_pad * (k1_pad + ks_pad)
                                + (k1_pad + ks_pad) * c_pad) * BF16
                               + m_pad * c_pad * (BF16 + F32)),
        )(p1p, w1p, psp, wsp)
        sss = _finalize_scale_shift(sts, m_true,
                                    _pad_vec(params["gs"], c_pad),
                                    _pad_vec(params["bes"], c_pad))
    else:
        y1, st1 = pl.pallas_call(
            _pass1_kernel,
            grid=(n_tiles,),
            in_specs=[pl.BlockSpec((tile_m, k1_pad), lambda i: (i, 0)),
                      pl.BlockSpec((k1_pad, c_pad), lambda i: (0, 0))],
            out_specs=(tile_spec, stat_spec),
            out_shape=(jax.ShapeDtypeStruct((m_pad, c_pad), jnp.bfloat16),
                       jax.ShapeDtypeStruct((n_tiles, 2, c_pad), jnp.float32)),
            compiler_params=parallel,
            cost_estimate=pl.CostEstimate(
                flops=2 * m_pad * k1_pad * c_pad,
                transcendentals=0,
                bytes_accessed=(m_pad * k1_pad + k1_pad * c_pad) * BF16
                               + m_pad * c_pad * BF16),
        )(p1p, w1p)

    ss1 = _finalize_scale_shift(st1, m_true,
                                _pad_vec(params["g1"], c_pad),
                                _pad_vec(params["be1"], c_pad))

    # --- call 2: bn1 + relu, emitted in bf16 (conv2 GEMM operand dtype) ---
    out1 = pl.pallas_call(
        _bn_relu_kernel,
        grid=(n_tiles,),
        in_specs=[tile_spec, vec_spec],
        out_specs=tile_spec,
        out_shape=jax.ShapeDtypeStruct((m_pad, c_pad), jnp.bfloat16),
        compiler_params=parallel,
    )(y1, ss1)

    # --- conv2 im2col on real rows / channels only ---
    # TODO(synk): fuse this gather into the conv2 kernel (halo windows / 9
    # shifted dot-accumulations) so out1 never round-trips HBM 9x inflated.
    out1_img = out1[:m_true, :out_channel].reshape(n, ho, wo, out_channel)
    p2, _, _ = _im2col(out1_img, 3, 1, 1)
    k2_pad = _round_up(9 * out_channel, 128)
    p2p = _pad2(p2, m_pad, k2_pad, jnp.bfloat16)
    w2p = _pad2(params["w2"], k2_pad, c_pad, jnp.bfloat16)

    # --- call 3: conv2 GEMM + stats ---
    y2, st2 = pl.pallas_call(
        _pass1_kernel,
        grid=(n_tiles,),
        in_specs=[pl.BlockSpec((tile_m, k2_pad), lambda i: (i, 0)),
                  pl.BlockSpec((k2_pad, c_pad), lambda i: (0, 0))],
        out_specs=(tile_spec, stat_spec),
        out_shape=(jax.ShapeDtypeStruct((m_pad, c_pad), jnp.float32),
                   jax.ShapeDtypeStruct((n_tiles, 2, c_pad), jnp.float32)),
        compiler_params=parallel,
        cost_estimate=pl.CostEstimate(
            flops=2 * m_pad * k2_pad * c_pad,
            transcendentals=0,
            bytes_accessed=(m_pad * k2_pad + k2_pad * c_pad) * BF16
                           + m_pad * c_pad * F32),
    )(p2p, w2p)

    ss2 = _finalize_scale_shift(st2, m_true,
                                _pad_vec(params["g2"], c_pad),
                                _pad_vec(params["be2"], c_pad))

    # --- call 4: bn2 + shortcut (+ its BN, fused) + relu ---
    if projection:
        out = pl.pallas_call(
            _final_projection_kernel,
            grid=(n_tiles,),
            in_specs=[tile_spec, vec_spec, tile_spec, vec_spec],
            out_specs=tile_spec,
            out_shape=jax.ShapeDtypeStruct((m_pad, c_pad), jnp.float32),
            compiler_params=parallel,
        )(y2, ss2, ys, sss)
    else:
        resid = _pad2(x.reshape(m_true, in_channel), m_pad, c_pad, jnp.float32)
        out = pl.pallas_call(
            _final_identity_kernel,
            grid=(n_tiles,),
            in_specs=[tile_spec, vec_spec, tile_spec],
            out_specs=tile_spec,
            out_shape=jax.ShapeDtypeStruct((m_pad, c_pad), jnp.float32),
            compiler_params=parallel,
        )(y2, ss2, resid)

    out = out[:m_true, :out_channel].reshape(n, ho, wo, out_channel)
    return jnp.transpose(out, (0, 3, 1, 2))                # back to NCHW


# --------------------------------- main -------------------------------------- #

if __name__ == "__main__":
    key = jax.random.PRNGKey(0)
    k_x, k_p, k_x2, k_p2 = jax.random.split(key, 4)

    fwd = jax.jit(basic_block_forward, static_argnums=(2, 3))

    # Case 1: channel change -> stride-2 conv1 + projection (conv+BN) shortcut.
    in_c, out_c = 4, 8
    x = jax.random.normal(k_x, (2, in_c, 16, 16), jnp.float32)       # NCHW
    params = init_basic_block_params(k_p, in_c, out_c)
    out = jax.block_until_ready(fwd(x, params, in_c, out_c))
    assert out.shape == (2, out_c, 8, 8), out.shape
    assert bool(jnp.all(out >= 0.0))          # final ReLU

    # Case 2: same channels -> stride-1 conv1 + identity shortcut.
    in_c2 = out_c2 = 8
    x2 = jax.random.normal(k_x2, (2, in_c2, 16, 16), jnp.float32)    # NCHW
    params2 = init_basic_block_params(k_p2, in_c2, out_c2)
    out2 = jax.block_until_ready(fwd(x2, params2, in_c2, out_c2))
    assert out2.shape == (2, out_c2, 16, 16), out2.shape
    assert bool(jnp.all(out2 >= 0.0))

    print("KERNEL_OK")
</pallas_src>

<mosaic_0001>
module attributes {stable_mosaic.version = 11 : i64} {
  func.func @_pass1_dual_kernel(%arg0: i32, %arg1: memref<128x128xbf16, #tpu.memory_space<vmem>>, %arg2: memref<128x128xbf16, #tpu.memory_space<vmem>>, %arg3: memref<128x128xbf16, #tpu.memory_space<vmem>>, %arg4: memref<128x128xbf16, #tpu.memory_space<vmem>>, %arg5: memref<128x128xbf16, #tpu.memory_space<vmem>>, %arg6: memref<1x2x128xf32, #tpu.memory_space<vmem>>, %arg7: memref<128x128xf32, #tpu.memory_space<vmem>>, %arg8: memref<1x2x128xf32, #tpu.memory_space<vmem>>) attributes {dimension_semantics = [#tpu.dimension_semantics<parallel>], iteration_bounds = array<i64: 1>, scalar_prefetch = 0 : i64, scratch_operands = 0 : i64, tpu.core_type = #tpu.core_type<tc>, window_params = [{transform_indices = @transform_0, window_bounds = array<i64: 128, 128>}, {pipeline_mode = #tpu.pipeline_mode<synchronous>, transform_indices = @transform_1, window_bounds = array<i64: 128, 128>}, {transform_indices = @transform_2, window_bounds = array<i64: 128, 128>}, {pipeline_mode = #tpu.pipeline_mode<synchronous>, transform_indices = @transform_3, window_bounds = array<i64: 128, 128>}, {transform_indices = @transform_4, window_bounds = array<i64: 128, 128>}, {transform_indices = @transform_5, window_bounds = array<i64: 1, 2, 128>}, {transform_indices = @transform_6, window_bounds = array<i64: 128, 128>}, {transform_indices = @transform_7, window_bounds = array<i64: 1, 2, 128>}]} {
    %c0 = arith.constant 0 : index
    %c0_0 = arith.constant 0 : index
    %0 = vector.load %arg1[%c0, %c0_0] : memref<128x128xbf16, #tpu.memory_space<vmem>>, vector<128x128xbf16>
    %c0_1 = arith.constant 0 : index
    %c0_2 = arith.constant 0 : index
    %1 = vector.load %arg2[%c0_1, %c0_2] : memref<128x128xbf16, #tpu.memory_space<vmem>>, vector<128x128xbf16>
    %cst = arith.constant dense<0.000000e+00> : vector<128x128xf32>
    %2 = tpu.matmul %0, %1, %cst {dimension_numbers = #tpu.dot_dimension_numbers<[1], [0], [0], [1], [0, 0, 1, 1], [], []>} : vector<128x128xbf16>, vector<128x128xbf16>, vector<128x128xf32> -> vector<128x128xf32>
    %3 = arith.truncf %2 : vector<128x128xf32> to vector<128x128xbf16>
    %c0_3 = arith.constant 0 : index
    %c0_4 = arith.constant 0 : index
    %4 = vector.load %arg5[%c0_3, %c0_4] : memref<128x128xbf16, #tpu.memory_space<vmem>>, vector<128x128xbf16>
    tpu.vector_store %arg5[%c0_3, %c0_4], %3 {strides = array<i32>} : memref<128x128xbf16, #tpu.memory_space<vmem>>, vector<128x128xbf16>,
    %cst_5 = arith.constant dense<0.000000e+00> : vector<128xf32>
    %5 = vector.multi_reduction <add>, %2, %cst_5 [0] : vector<128x128xf32> to vector<128xf32>
    %6 = vector.shape_cast %5 : vector<128xf32> to vector<1x128xf32>
    %7 = arith.mulf %2, %2 : vector<128x128xf32>
    %cst_6 = arith.constant dense<0.000000e+00> : vector<128xf32>
    %8 = vector.multi_reduction <add>, %7, %cst_6 [0] : vector<128x128xf32> to vector<128xf32>
    %9 = vector.shape_cast %8 : vector<128xf32> to vector<1x128xf32>
    %10 = tpu.concatenate %6, %9 in 0 : vector<1x128xf32>, vector<1x128xf32> -> vector<2x128xf32>
    %c0_7 = arith.constant 0 : index
    %c0_8 = arith.constant 0 : index
    %c0_9 = arith.constant 0 : index
    %11 = vector.load %arg6[%c0_7, %c0_8, %c0_9] : memref<1x2x128xf32, #tpu.memory_space<vmem>>, vector<1x2x128xf32>
    %12 = vector.shape_cast %11 : vector<1x2x128xf32> to vector<2x128xf32>
    %13 = vector.shape_cast %10 : vector<2x128xf32> to vector<1x2x128xf32>
    tpu.vector_store %arg6[%c0_7, %c0_8, %c0_9], %13 {strides = array<i32>} : memref<1x2x128xf32, #tpu.memory_space<vmem>>, vector<1x2x128xf32>,
    %c0_10 = arith.constant 0 : index
    %c0_11 = arith.constant 0 : index
    %14 = vector.load %arg3[%c0_10, %c0_11] : memref<128x128xbf16, #tpu.memory_space<vmem>>, vector<128x128xbf16>
    %c0_12 = arith.constant 0 : index
    %c0_13 = arith.constant 0 : index
    %15 = vector.load %arg4[%c0_12, %c0_13] : memref<128x128xbf16, #tpu.memory_space<vmem>>, vector<128x128xbf16>
    %cst_14 = arith.constant dense<0.000000e+00> : vector<128x128xf32>
    %16 = tpu.matmul %14, %15, %cst_14 {dimension_numbers = #tpu.dot_dimension_numbers<[1], [0], [0], [1], [0, 0, 1, 1], [], []>} : vector<128x128xbf16>, vector<128x128xbf16>, vector<128x128xf32> -> vector<128x128xf32>
    %c0_15 = arith.constant 0 : index
    %c0_16 = arith.constant 0 : index
    %17 = vector.load %arg7[%c0_15, %c0_16] : memref<128x128xf32, #tpu.memory_space<vmem>>, vector<128x128xf32>
    tpu.vector_store %arg7[%c0_15, %c0_16], %16 {strides = array<i32>} : memref<128x128xf32, #tpu.memory_space<vmem>>, vector<128x128xf32>,
    %cst_17 = arith.constant dense<0.000000e+00> : vector<128xf32>
    %18 = vector.multi_reduction <add>, %16, %cst_17 [0] : vector<128x128xf32> to vector<128xf32>
    %19 = vector.shape_cast %18 : vector<128xf32> to vector<1x128xf32>
    %20 = arith.mulf %16, %16 : vector<128x128xf32>
    %cst_18 = arith.constant dense<0.000000e+00> : vector<128xf32>
    %21 = vector.multi_reduction <add>, %20, %cst_18 [0] : vector<128x128xf32> to vector<128xf32>
    %22 = vector.shape_cast %21 : vector<128xf32> to vector<1x128xf32>
    %23 = tpu.concatenate %19, %22 in 0 : vector<1x128xf32>, vector<1x128xf32> -> vector<2x128xf32>
    %c0_19 = arith.constant 0 : index
    %c0_20 = arith.constant 0 : index
    %c0_21 = arith.constant 0 : index
    %24 = vector.load %arg8[%c0_19, %c0_20, %c0_21] : memref<1x2x128xf32, #tpu.memory_space<vmem>>, vector<1x2x128xf32>
    %25 = vector.shape_cast %24 : vector<1x2x128xf32> to vector<2x128xf32>
    %26 = vector.shape_cast %23 : vector<2x128xf32> to vector<1x2x128xf32>
    tpu.vector_store %arg8[%c0_19, %c0_20, %c0_21], %26 {strides = array<i32>} : memref<1x2x128xf32, #tpu.memory_space<vmem>>, vector<1x2x128xf32>,
    return
  }
  func.func @transform_0(%arg0: i32) -> (i32, i32) {
    %c0_i32 = arith.constant 0 : i32
    %c0_i32_0 = arith.constant 0 : i32
    return %arg0, %c0_i32 : i32, i32
  }
  func.func @transform_1(%arg0: i32) -> (i32, i32) {
    %c0_i32 = arith.constant 0 : i32
    %c0_i32_0 = arith.constant 0 : i32
    %c0_i32_1 = arith.constant 0 : i32
    return %c0_i32, %c0_i32_0 : i32, i32
  }
  func.func @transform_2(%arg0: i32) -> (i32, i32) {
    %c0_i32 = arith.constant 0 : i32
    %c0_i32_0 = arith.constant 0 : i32
    return %arg0, %c0_i32 : i32, i32
  }
  func.func @transform_3(%arg0: i32) -> (i32, i32) {
    %c0_i32 = arith.constant 0 : i32
    %c0_i32_0 = arith.constant 0 : i32
    %c0_i32_1 = arith.constant 0 : i32
    return %c0_i32, %c0_i32_0 : i32, i32
  }
  func.func @transform_4(%arg0: i32) -> (i32, i32) {
    %c0_i32 = arith.constant 0 : i32
    %c0_i32_0 = arith.constant 0 : i32
    return %arg0, %c0_i32 : i32, i32
  }
  func.func @transform_5(%arg0: i32) -> (i32, i32, i32) {
    %c0_i32 = arith.constant 0 : i32
    %c0_i32_0 = arith.constant 0 : i32
    %c0_i32_1 = arith.constant 0 : i32
    return %arg0, %c0_i32, %c0_i32_0 : i32, i32, i32
  }
  func.func @transform_6(%arg0: i32) -> (i32, i32) {
    %c0_i32 = arith.constant 0 : i32
    %c0_i32_0 = arith.constant 0 : i32
    return %arg0, %c0_i32 : i32, i32
  }
  func.func @transform_7(%arg0: i32) -> (i32, i32, i32) {
    %c0_i32 = arith.constant 0 : i32
    %c0_i32_0 = arith.constant 0 : i32
    %c0_i32_1 = arith.constant 0 : i32
    return %arg0, %c0_i32, %c0_i32_0 : i32, i32, i32
  }
}

module attributes {stable_mosaic.version = 11 : i64} {
  func.func @_bn_relu_kernel(%arg0: i32, %arg1: memref<128x128xbf16, #tpu.memory_space<vmem>>, %arg2: memref<2x128xf32, #tpu.memory_space<vmem>>, %arg3: memref<128x128xbf16, #tpu.memory_space<vmem>>) attributes {dimension_semantics = [#tpu.dimension_semantics<parallel>], iteration_bounds = array<i64: 1>, scalar_prefetch = 0 : i64, scratch_operands = 0 : i64, tpu.core_type = #tpu.core_type<tc>, window_params = [{transform_indices = @transform_0, window_bounds = array<i64: 128, 128>}, {pipeline_mode = #tpu.pipeline_mode<synchronous>, transform_indices = @transform_1, window_bounds = array<i64: 2, 128>}, {transform_indices = @transform_2, window_bounds = array<i64: 128, 128>}]} {
    %c0 = arith.constant 0 : index
    %c0_0 = arith.constant 0 : index
    %0 = vector.load %arg1[%c0, %c0_0] : memref<128x128xbf16, #tpu.memory_space<vmem>>, vector<128x128xbf16>
    %1 = arith.extf %0 : vector<128x128xbf16> to vector<128x128xf32>
    %c0_1 = arith.constant 0 : index
    %c0_2 = arith.constant 0 : index
    %2 = vector.load %arg2[%c0_1, %c0_2] : memref<2x128xf32, #tpu.memory_space<vmem>>, vector<1x128xf32>
    %3 = vector.broadcast %2 : vector<1x128xf32> to vector<128x128xf32>
    %4 = arith.mulf %1, %3 : vector<128x128xf32>
    %c1 = arith.constant 1 : index
    %c0_3 = arith.constant 0 : index
    %5 = vector.load %arg2[%c1, %c0_3] : memref<2x128xf32, #tpu.memory_space<vmem>>, vector<1x128xf32>
    %6 = vector.broadcast %5 : vector<1x128xf32> to vector<128x128xf32>
    %7 = arith.addf %4, %6 : vector<128x128xf32>
    %cst = arith.constant 0.000000e+00 : f32
    %8 = vector.broadcast %cst : f32 to vector<128x128xf32>
    %9 = arith.maximumf %7, %8 : vector<128x128xf32>
    %10 = arith.truncf %9 : vector<128x128xf32> to vector<128x128xbf16>
    %c0_4 = arith.constant 0 : index
    %c0_5 = arith.constant 0 : index
    %11 = vector.load %arg3[%c0_4, %c0_5] : memref<128x128xbf16, #tpu.memory_space<vmem>>, vector<128x128xbf16>
    tpu.vector_store %arg3[%c0_4, %c0_5], %10 {strides = array<i32>} : memref<128x128xbf16, #tpu.memory_space<vmem>>, vector<128x128xbf16>,
    return
  }
  func.func @transform_0(%arg0: i32) -> (i32, i32) {
    %c0_i32 = arith.constant 0 : i32
    %c0_i32_0 = arith.constant 0 : i32
    return %arg0, %c0_i32 : i32, i32
  }
  func.func @transform_1(%arg0: i32) -> (i32, i32) {
    %c0_i32 = arith.constant 0 : i32
    %c0_i32_0 = arith.constant 0 : i32
    %c0_i32_1 = arith.constant 0 : i32
    return %c0_i32, %c0_i32_0 : i32, i32
  }
  func.func @transform_2(%arg0: i32) -> (i32, i32) {
    %c0_i32 = arith.constant 0 : i32
    %c0_i32_0 = arith.constant 0 : i32
    return %arg0, %c0_i32 : i32, i32
  }
}

module attributes {stable_mosaic.version = 11 : i64} {
  func.func @_pass1_kernel(%arg0: i32, %arg1: memref<128x128xbf16, #tpu.memory_space<vmem>>, %arg2: memref<128x128xbf16, #tpu.memory_space<vmem>>, %arg3: memref<128x128xf32, #tpu.memory_space<vmem>>, %arg4: memref<1x2x128xf32, #tpu.memory_space<vmem>>) attributes {dimension_semantics = [#tpu.dimension_semantics<parallel>], iteration_bounds = array<i64: 1>, scalar_prefetch = 0 : i64, scratch_operands = 0 : i64, tpu.core_type = #tpu.core_type<tc>, window_params = [{transform_indices = @transform_0, window_bounds = array<i64: 128, 128>}, {pipeline_mode = #tpu.pipeline_mode<synchronous>, transform_indices = @transform_1, window_bounds = array<i64: 128, 128>}, {transform_indices = @transform_2, window_bounds = array<i64: 128, 128>}, {transform_indices = @transform_3, window_bounds = array<i64: 1, 2, 128>}]} {
    %c0 = arith.constant 0 : index
    %c0_0 = arith.constant 0 : index
    %0 = vector.load %arg1[%c0, %c0_0] : memref<128x128xbf16, #tpu.memory_space<vmem>>, vector<128x128xbf16>
    %c0_1 = arith.constant 0 : index
    %c0_2 = arith.constant 0 : index
    %1 = vector.load %arg2[%c0_1, %c0_2] : memref<128x128xbf16, #tpu.memory_space<vmem>>, vector<128x128xbf16>
    %cst = arith.constant dense<0.000000e+00> : vector<128x128xf32>
    %2 = tpu.matmul %0, %1, %cst {dimension_numbers = #tpu.dot_dimension_numbers<[1], [0], [0], [1], [0, 0, 1, 1], [], []>} : vector<128x128xbf16>, vector<128x128xbf16>, vector<128x128xf32> -> vector<128x128xf32>
    %c0_3 = arith.constant 0 : index
    %c0_4 = arith.constant 0 : index
    %3 = vector.load %arg3[%c0_3, %c0_4] : memref<128x128xf32, #tpu.memory_space<vmem>>, vector<128x128xf32>
    tpu.vector_store %arg3[%c0_3, %c0_4], %2 {strides = array<i32>} : memref<128x128xf32, #tpu.memory_space<vmem>>, vector<128x128xf32>,
    %cst_5 = arith.constant dense<0.000000e+00> : vector<128xf32>
    %4 = vector.multi_reduction <add>, %2, %cst_5 [0] : vector<128x128xf32> to vector<128xf32>
    %5 = vector.shape_cast %4 : vector<128xf32> to vector<1x128xf32>
    %6 = arith.mulf %2, %2 : vector<128x128xf32>
    %cst_6 = arith.constant dense<0.000000e+00> : vector<128xf32>
    %7 = vector.multi_reduction <add>, %6, %cst_6 [0] : vector<128x128xf32> to vector<128xf32>
    %8 = vector.shape_cast %7 : vector<128xf32> to vector<1x128xf32>
    %9 = tpu.concatenate %5, %8 in 0 : vector<1x128xf32>, vector<1x128xf32> -> vector<2x128xf32>
    %c0_7 = arith.constant 0 : index
    %c0_8 = arith.constant 0 : index
    %c0_9 = arith.constant 0 : index
    %10 = vector.load %arg4[%c0_7, %c0_8, %c0_9] : memref<1x2x128xf32, #tpu.memory_space<vmem>>, vector<1x2x128xf32>
    %11 = vector.shape_cast %10 : vector<1x2x128xf32> to vector<2x128xf32>
    %12 = vector.shape_cast %9 : vector<2x128xf32> to vector<1x2x128xf32>
    tpu.vector_store %arg4[%c0_7, %c0_8, %c0_9], %12 {strides = array<i32>} : memref<1x2x128xf32, #tpu.memory_space<vmem>>, vector<1x2x128xf32>,
    return
  }
  func.func @transform_0(%arg0: i32) -> (i32, i32) {
    %c0_i32 = arith.constant 0 : i32
    %c0_i32_0 = arith.constant 0 : i32
    return %arg0, %c0_i32 : i32, i32
  }
  func.func @transform_1(%arg0: i32) -> (i32, i32) {
    %c0_i32 = arith.constant 0 : i32
    %c0_i32_0 = arith.constant 0 : i32
    %c0_i32_1 = arith.constant 0 : i32
    return %c0_i32, %c0_i32_0 : i32, i32
  }
  func.func @transform_2(%arg0: i32) -> (i32, i32) {
    %c0_i32 = arith.constant 0 : i32
    %c0_i32_0 = arith.constant 0 : i32
    return %arg0, %c0_i32 : i32, i32
  }
  func.func @transform_3(%arg0: i32) -> (i32, i32, i32) {
    %c0_i32 = arith.constant 0 : i32
    %c0_i32_0 = arith.constant 0 : i32
    %c0_i32_1 = arith.constant 0 : i32
    return %arg0, %c0_i32, %c0_i32_0 : i32, i32, i32
  }
}

module attributes {stable_mosaic.version = 11 : i64} {
  func.func @_final_projection_kernel(%arg0: i32, %arg1: memref<128x128xf32, #tpu.memory_space<vmem>>, %arg2: memref<2x128xf32, #tpu.memory_space<vmem>>, %arg3: memref<128x128xf32, #tpu.memory_space<vmem>>, %arg4: memref<2x128xf32, #tpu.memory_space<vmem>>, %arg5: memref<128x128xf32, #tpu.memory_space<vmem>>) attributes {dimension_semantics = [#tpu.dimension_semantics<parallel>], iteration_bounds = array<i64: 1>, scalar_prefetch = 0 : i64, scratch_operands = 0 : i64, tpu.core_type = #tpu.core_type<tc>, window_params = [{transform_indices = @transform_0, window_bounds = array<i64: 128, 128>}, {pipeline_mode = #tpu.pipeline_mode<synchronous>, transform_indices = @transform_1, window_bounds = array<i64: 2, 128>}, {transform_indices = @transform_2, window_bounds = array<i64: 128, 128>}, {pipeline_mode = #tpu.pipeline_mode<synchronous>, transform_indices = @transform_3, window_bounds = array<i64: 2, 128>}, {transform_indices = @transform_4, window_bounds = array<i64: 128, 128>}]} {
    %c0 = arith.constant 0 : index
    %c0_0 = arith.constant 0 : index
    %0 = vector.load %arg1[%c0, %c0_0] : memref<128x128xf32, #tpu.memory_space<vmem>>, vector<128x128xf32>
    %c0_1 = arith.constant 0 : index
    %c0_2 = arith.constant 0 : index
    %1 = vector.load %arg2[%c0_1, %c0_2] : memref<2x128xf32, #tpu.memory_space<vmem>>, vector<1x128xf32>
    %2 = vector.broadcast %1 : vector<1x128xf32> to vector<128x128xf32>
    %3 = arith.mulf %0, %2 : vector<128x128xf32>
    %c1 = arith.constant 1 : index
    %c0_3 = arith.constant 0 : index
    %4 = vector.load %arg2[%c1, %c0_3] : memref<2x128xf32, #tpu.memory_space<vmem>>, vector<1x128xf32>
    %5 = vector.broadcast %4 : vector<1x128xf32> to vector<128x128xf32>
    %6 = arith.addf %3, %5 : vector<128x128xf32>
    %c0_4 = arith.constant 0 : index
    %c0_5 = arith.constant 0 : index
    %7 = vector.load %arg3[%c0_4, %c0_5] : memref<128x128xf32, #tpu.memory_space<vmem>>, vector<128x128xf32>
    %c0_6 = arith.constant 0 : index
    %c0_7 = arith.constant 0 : index
    %8 = vector.load %arg4[%c0_6, %c0_7] : memref<2x128xf32, #tpu.memory_space<vmem>>, vector<1x128xf32>
    %9 = vector.broadcast %8 : vector<1x128xf32> to vector<128x128xf32>
    %10 = arith.mulf %7, %9 : vector<128x128xf32>
    %11 = arith.addf %6, %10 : vector<128x128xf32>
    %c1_8 = arith.constant 1 : index
    %c0_9 = arith.constant 0 : index
    %12 = vector.load %arg4[%c1_8, %c0_9] : memref<2x128xf32, #tpu.memory_space<vmem>>, vector<1x128xf32>
    %13 = vector.broadcast %12 : vector<1x128xf32> to vector<128x128xf32>
    %14 = arith.addf %11, %13 : vector<128x128xf32>
    %cst = arith.constant 0.000000e+00 : f32
    %15 = vector.broadcast %cst : f32 to vector<128x128xf32>
    %16 = arith.maximumf %14, %15 : vector<128x128xf32>
    %c0_10 = arith.constant 0 : index
    %c0_11 = arith.constant 0 : index
    %17 = vector.load %arg5[%c0_10, %c0_11] : memref<128x128xf32, #tpu.memory_space<vmem>>, vector<128x128xf32>
    tpu.vector_store %arg5[%c0_10, %c0_11], %16 {strides = array<i32>} : memref<128x128xf32, #tpu.memory_space<vmem>>, vector<128x128xf32>,
    return
  }
  func.func @transform_0(%arg0: i32) -> (i32, i32) {
    %c0_i32 = arith.constant 0 : i32
    %c0_i32_0 = arith.constant 0 : i32
    return %arg0, %c0_i32 : i32, i32
  }
  func.func @transform_1(%arg0: i32) -> (i32, i32) {
    %c0_i32 = arith.constant 0 : i32
    %c0_i32_0 = arith.constant 0 : i32
    %c0_i32_1 = arith.constant 0 : i32
    return %c0_i32, %c0_i32_0 : i32, i32
  }
  func.func @transform_2(%arg0: i32) -> (i32, i32) {
    %c0_i32 = arith.constant 0 : i32
    %c0_i32_0 = arith.constant 0 : i32
    return %arg0, %c0_i32 : i32, i32
  }
  func.func @transform_3(%arg0: i32) -> (i32, i32) {
    %c0_i32 = arith.constant 0 : i32
    %c0_i32_0 = arith.constant 0 : i32
    %c0_i32_1 = arith.constant 0 : i32
    return %c0_i32, %c0_i32_0 : i32, i32
  }
  func.func @transform_4(%arg0: i32) -> (i32, i32) {
    %c0_i32 = arith.constant 0 : i32
    %c0_i32_0 = arith.constant 0 : i32
    return %arg0, %c0_i32 : i32, i32
  }
}

</mosaic_0001>

<bundles_post_ra>
// kernel: basic_block_forward.5
= control target key start
LH: loop header
LB: loop body
LE: loop exit
PB: predicated region body
PF: predicated region fallthrough
CT: control target
= control target key end

     0   :  { %s410_s0 = inlined_call_operand.vmem [shape: bf16[128,128], index: 0, kind: input, shape index: {}]   ;;  %s411_s1 = inlined_call_operand.vmem [shape: f32[2,128], index: 1, kind: input, shape index: {}]   ;;  %s412_s2 = inlined_call_operand.vmem [shape: bf16[128,128], index: 2, kind: output, shape index: {}]  }
   0x1   :  { %v220_v0 = vld [vmem:[%s410_s0] sm:$0xff]   ;;  %v291_v4 = vld [vmem:[%s410_s0 + $0x8] sm:$0xff]   ;;  %v292_v5 = vld [vmem:[%s410_s0 + $0x10] sm:$0xff]  }
   0x2   :  { %v326_v1 = vld [vmem:[%s411_s1] ss:$0 sm:$0xff]  ;;  %v221_v2 = vunpack.c.l.bf16 %v220_v0  ;;  %v222_v3 = vunpack.c.h.bf16 %v220_v0  ;;  %v293_v6 = vld [vmem:[%s410_s0 + $0x18] sm:$0xff]   ;;  %v340_v7 = vld [vmem:[%s411_s1 + $0x1] ss:$0 sm:$0xff]  ;;  %v225_v8 = vunpack.c.l.bf16 %v291_v4  ;;  %v226_v9 = vunpack.c.h.bf16 %v291_v4 }
   0x3   :  { %v229_v10 = vunpack.c.l.bf16 %v292_v5  ;;  %v230_v11 = vunpack.c.h.bf16 %v292_v5  ;;  %v233_v14 = vunpack.c.l.bf16 %v293_v6  ;;  %v234_v15 = vunpack.c.h.bf16 %v293_v6  ;;  %v294_v28 = vld [vmem:[%s410_s0 + $0x20] sm:$0xff]   ;;  %v295_v33 = vld [vmem:[%s410_s0 + $0x28] sm:$0xff]   ;;  %v296_v38 = vld [vmem:[%s410_s0 + $0x30] sm:$0xff]  }
   0x4   :  { %v48_v12 = vmul.f32 %v221_v2, %v326_v1  ;;  %v49_v13 = vmul.f32 %v222_v3, %v326_v1  ;;  %v50_v16 = vmul.f32 %v225_v8, %v326_v1  ;;  %v51_v17 = vmul.f32 %v226_v9, %v326_v1  ;;  %v297_v43 = vld [vmem:[%s410_s0 + $0x38] sm:$0xff]  }
   0x5   :  { %v52_v18 = vmul.f32 %v229_v10, %v326_v1  ;;  %v53_v19 = vmul.f32 %v230_v11, %v326_v1  ;;  %v54_v22 = vmul.f32 %v233_v14, %v326_v1  ;;  %v55_v23 = vmul.f32 %v234_v15, %v326_v1 }
   0x6   :  { %v69_v20 = vadd.f32 %v340_v7, %v48_v12  ;;  %v70_v21 = vadd.f32 %v340_v7, %v49_v13  ;;  %v71_v24 = vadd.f32 %v340_v7, %v50_v16  ;;  %v72_v25 = vadd.f32 %v340_v7, %v51_v17 }
   0x7   :  { %v73_v26 = vadd.f32 %v340_v7, %v52_v18  ;;  %v74_v27 = vadd.f32 %v340_v7, %v53_v19  ;;  %v75_v31 = vadd.f32 %v340_v7, %v54_v22  ;;  %v76_v32 = vadd.f32 %v340_v7, %v55_v23 }
   0x8   :  { %v85_v29 = vmax.f32 %v69_v20, 0.0  ;;  %v86_v30 = vmax.f32 %v70_v21, 0.0  ;;  %v87_v34 = vmax.f32 %v71_v24, 0.0  ;;  %v88_v35 = vmax.f32 %v72_v25, 0.0 }
   0x9   :  { %v89_v36 = vmax.f32 %v73_v26, 0.0  ;;  %v90_v37 = vmax.f32 %v74_v27, 0.0  ;;  %v91_v40 = vmax.f32 %v75_v31, 0.0  ;;  %v92_v41 = vmax.f32 %v76_v32, 0.0 }
   0xa   :  { %v254_v39 = vpack.c.bf16 %v86_v30, %v85_v29  ;;  %v237_v42 = vunpack.c.l.bf16 %v294_v28  ;;  %v259_v44 = vpack.c.bf16 %v88_v35, %v87_v34  ;;  %v238_v46 = vunpack.c.h.bf16 %v294_v28 }
   0xb   :  { %v264_v45 = vpack.c.bf16 %v90_v37, %v89_v36  ;;  %v241_v47 = vunpack.c.l.bf16 %v295_v33  ;;  %v269_v48 = vpack.c.bf16 %v92_v41, %v91_v40  ;;  %v242_v50 = vunpack.c.h.bf16 %v295_v33 }
   0xc   :  { %255 = vst [vmem:[%s412_s2] sm:$0xff] %v254_v39   ;;  %v56_v49 = vmul.f32 %v237_v42, %v326_v1  ;;  %v245_v51 = vunpack.c.l.bf16 %v296_v38  ;;  %298 = vst [vmem:[%s412_s2 + $0x8] sm:$0xff] %v259_v44   ;;  %v57_v52 = vmul.f32 %v238_v46, %v326_v1  ;;  %v246_v54 = vunpack.c.h.bf16 %v296_v38 }
   0xd   :  { %299 = vst [vmem:[%s412_s2 + $0x10] sm:$0xff] %v264_v45   ;;  %v58_v53 = vmul.f32 %v241_v47, %v326_v1  ;;  %v249_v55 = vunpack.c.l.bf16 %v297_v43  ;;  %300 = vst [vmem:[%s412_s2 + $0x18] sm:$0xff] %v269_v48   ;;  %v59_v57 = vmul.f32 %v242_v50, %v326_v1  ;;  %v250_v59 = vunpack.c.h.bf16 %v297_v43 }
   0xe   :  { %v77_v56 = vadd.f32 %v340_v7, %v56_v49  ;;  %v60_v58 = vmul.f32 %v245_v51, %v326_v1  ;;  %v78_v60 = vadd.f32 %v340_v7, %v57_v52  ;;  %v61_v62 = vmul.f32 %v246_v54, %v326_v1 }
   0xf   :  { %v79_v61 = vadd.f32 %v340_v7, %v58_v53  ;;  %v62_v63 = vmul.f32 %v249_v55, %v326_v1  ;;  %v80_v2 = vadd.f32 %v340_v7, %v59_v57  ;;  %v63_v4 = vmul.f32 %v250_v59, %v326_v1 }
  0x10   :  { %v93_v0 = vmax.f32 %v77_v56, 0.0  ;;  %v81_v3 = vadd.f32 %v340_v7, %v60_v58  ;;  %v94_v5 = vmax.f32 %v78_v60, 0.0  ;;  %v82_v8 = vadd.f32 %v340_v7, %v61_v62 }
  0x11   :  { %v95_v6 = vmax.f32 %v79_v61, 0.0  ;;  %v83_v9 = vadd.f32 %v340_v7, %v62_v63  ;;  %v96_v10 = vmax.f32 %v80_v2, 0.0  ;;  %v84_v12 = vadd.f32 %v340_v7, %v63_v4 }
  0x12   :  { %v97_v11 = vmax.f32 %v81_v3, 0.0  ;;  %v274_v13 = vpack.c.bf16 %v94_v5, %v93_v0  ;;  %v98_v14 = vmax.f32 %v82_v8, 0.0 }
  0x13   :  { %v99_v15 = vmax.f32 %v83_v9, 0.0  ;;  %v279_v16 = vpack.c.bf16 %v96_v10, %v95_v6  ;;  %v100_v17 = vmax.f32 %v84_v12, 0.0 }
  0x14   :  { %301 = vst [vmem:[%s412_s2 + $0x20] sm:$0xff] %v274_v13   ;;  %v284_v1 = vpack.c.bf16 %v98_v14, %v97_v11 }
  0x15   :  { %302 = vst [vmem:[%s412_s2 + $0x28] sm:$0xff] %v279_v16   ;;  %v289_v18 = vpack.c.bf16 %v100_v17, %v99_v15 }
  0x16   :  { %303 = vst [vmem:[%s412_s2 + $0x30] sm:$0xff] %v284_v1  }
  0x17   :  { %304 = vst [vmem:[%s412_s2 + $0x38] sm:$0xff] %v289_v18  }

// kernel: basic_block_forward.4
= control target key start
LH: loop header
LB: loop body
LE: loop exit
PB: predicated region body
PF: predicated region fallthrough
CT: control target
= control target key end

     0   :  { %vm385_vm0 = vcmask 1040384   ;;  %s1158_s1 = inlined_call_operand.vmem [shape: bf16[128,128], index: 1, kind: input, shape index: {}]   ;;  %s1159_s3 = inlined_call_operand.vmem [shape: bf16[128,128], index: 3, kind: input, shape index: {}]   ;;  %s1160_s0 = inlined_call_operand.vmem [shape: bf16[128,128], index: 0, kind: input, shape index: {}]   ;;  %s1161_s2 = inlined_call_operand.vmem [shape: bf16[128,128], index: 2, kind: input, shape index: {}]   ;;  %s1162_s6 = inlined_call_operand.vmem [shape: f32[128,128], index: 6, kind: output, shape index: {2}]   ;;  %s1163_s4 = inlined_call_operand.vmem [shape: bf16[128,128], index: 4, kind: output, shape index: {0}]   ;;  %s1164_s5 = inlined_call_operand.vmem [shape: f32[1,2,128], index: 5, kind: output, shape index: {1}]   ;;  %s1165_s7 = inlined_call_operand.vmem [shape: f32[1,2,128], index: 7, kind: output, shape index: {3}]  }
   0x1   :  { %v912_v0 = vld [vmem:[%s1158_s1] sm:$0xff]   ;;  %v914_v2 = vld [vmem:[%s1158_s1 + $0x8] sm:$0xff]   ;;  %v916_v4 = vld [vmem:[%s1158_s1 + $0x10] sm:$0xff]  }
   0x2   :  { %v913_v1 = vld [vmem:[%s1159_s3] sm:$0xff]   ;;  %848 = vmatprep.subr.bf16.mxu0 %v912_v0  ;;  %v915_v3 = vld [vmem:[%s1159_s3 + $0x8] sm:$0xff]   ;;  %v917_v5 = vld [vmem:[%s1159_s3 + $0x10] sm:$0xff]  }
   0x3   :  { %880 = vmatprep.subr.bf16.mxu1 %v913_v1  ;;  %849 = vmatpush3.bf16.msra.mxu0 %v912_v0  ;;  %v918_v6 = vld [vmem:[%s1158_s1 + $0x18] sm:$0xff]   ;;  %v920_v8 = vld [vmem:[%s1158_s1 + $0x20] sm:$0xff]   ;;  %v922_v10 = vld [vmem:[%s1158_s1 + $0x28] sm:$0xff]  }
   0x4   :  { %881 = vmatpush3.bf16.msra.mxu1 %v913_v1  ;;  %850 = vmatprep.subr.bf16.mxu0 %v914_v2  ;;  %v919_v7 = vld [vmem:[%s1159_s3 + $0x18] sm:$0xff]   ;;  %v921_v9 = vld [vmem:[%s1159_s3 + $0x20] sm:$0xff]   ;;  %v923_v11 = vld [vmem:[%s1159_s3 + $0x28] sm:$0xff]  }
   0x5   :  { %882 = vmatprep.subr.bf16.mxu1 %v915_v3  ;;  %v928_v12 = vld [vmem:[%s1160_s0] sm:$0xff]   ;;  %v924_v14 = vld [vmem:[%s1158_s1 + $0x30] sm:$0xff]   ;;  %v926_v16 = vld [vmem:[%s1158_s1 + $0x38] sm:$0xff]  }
   0x6   :  { %v929_v13 = vld [vmem:[%s1161_s2] sm:$0xff]   ;;  %864 = vmatprep.mubr.bf16.mxu0 %v928_v12  ;;  %v925_v15 = vld [vmem:[%s1159_s3 + $0x30] sm:$0xff]   ;;  %v927_v17 = vld [vmem:[%s1159_s3 + $0x38] sm:$0xff]  }
   0x7   :  { %851 = vmatpush3.bf16.msra.mxu0 %v914_v2  ;;  %896 = vmatprep.mubr.bf16.mxu1 %v929_v13  ;;  %v930_v18 = vld [vmem:[%s1160_s0 + $0x8] sm:$0xff]   ;;  %v932_v20 = vld [vmem:[%s1160_s0 + $0x10] sm:$0xff]   ;;  %v934_v22 = vld [vmem:[%s1160_s0 + $0x18] sm:$0xff]  }
   0x8   :  { %883 = vmatpush3.bf16.msra.mxu1 %v915_v3  ;;  %852 = vmatprep.subr.bf16.mxu0 %v916_v4  ;;  %v931_v19 = vld [vmem:[%s1161_s2 + $0x8] sm:$0xff]   ;;  %v933_v21 = vld [vmem:[%s1161_s2 + $0x10] sm:$0xff]   ;;  %v935_v23 = vld [vmem:[%s1161_s2 + $0x18] sm:$0xff]  }
   0x9   :  { %884 = vmatprep.subr.bf16.mxu1 %v917_v5  ;;  %v936_v24 = vld [vmem:[%s1160_s0 + $0x20] sm:$0xff]   ;;  %v938_v26 = vld [vmem:[%s1160_s0 + $0x28] sm:$0xff]   ;;  %v940_v28 = vld [vmem:[%s1160_s0 + $0x30] sm:$0xff]  }
   0xa   :  { %v937_v25 = vld [vmem:[%s1161_s2 + $0x20] sm:$0xff]   ;;  %v939_v27 = vld [vmem:[%s1161_s2 + $0x28] sm:$0xff]   ;;  %v941_v29 = vld [vmem:[%s1161_s2 + $0x30] sm:$0xff]  }
   0xb   :  { %853 = vmatpush3.bf16.msra.mxu0 %v916_v4  ;;  %v942_v30 = vld [vmem:[%s1160_s0 + $0x38] sm:$0xff]  }
   0xc   :  { %885 = vmatpush3.bf16.msra.mxu1 %v917_v5  ;;  %854 = vmatprep.subr.bf16.mxu0 %v918_v6  ;;  %v943_v31 = vld [vmem:[%s1161_s2 + $0x38] sm:$0xff]  }
   0xd   :  { %886 = vmatprep.subr.bf16.mxu1 %v919_v7 }
   0xf   :  { %855 = vmatpush3.bf16.msra.mxu0 %v918_v6 }
  0x10   :  { %887 = vmatpush3.bf16.msra.mxu1 %v919_v7  ;;  %856 = vmatprep.subr.bf16.mxu0 %v920_v8 }
  0x11   :  { %888 = vmatprep.subr.bf16.mxu1 %v921_v9 }
  0x13   :  { %857 = vmatpush3.bf16.msra.mxu0 %v920_v8 }
  0x14   :  { %889 = vmatpush3.bf16.msra.mxu1 %v921_v9  ;;  %858 = vmatprep.subr.bf16.mxu0 %v922_v10 }
  0x15   :  { %890 = vmatprep.subr.bf16.mxu1 %v923_v11 }
  0x17   :  { %859 = vmatpush3.bf16.msra.mxu0 %v922_v10 }
  0x18   :  { %891 = vmatpush3.bf16.msra.mxu1 %v923_v11  ;;  %860 = vmatprep.subr.bf16.mxu0 %v924_v14 }
  0x19   :  { %892 = vmatprep.subr.bf16.mxu1 %v925_v15 }
  0x1b   :  { %861 = vmatpush3.bf16.msra.mxu0 %v924_v14 }
  0x1c   :  { %893 = vmatpush3.bf16.msra.mxu1 %v925_v15  ;;  %862 = vmatprep.subr.bf16.mxu0 %v926_v16 }
  0x1d   :  { %894 = vmatprep.subr.bf16.mxu1 %v927_v17 }
  0x1f   :  { %863 = vmatpush3.bf16.msra.mxu0 %v926_v16 }
  0x20   :  { %895 = vmatpush3.bf16.msra.mxu1 %v927_v17 }
  0x22   :  { %865 = vmatmul.mubr.bf16.vlgmr.msra.gmra.mrb[0].mxu0 %v930_v18 }
  0x23   :  { %897 = vmatmul.mubr.bf16.vlgmr.msra.gmra.mrb[0].mxu1 %v931_v19  ;;  %868 = vmatprep.mubr.bf16.mxu0 %v932_v20 }
  0x24   :  { %900 = vmatprep.mubr.bf16.mxu1 %v933_v21 }
  0x2a   :  { %869 = vmatmul.mubr.bf16.gmra.mrb[4].mxu0 %v934_v22 }
  0x2b   :  { %901 = vmatmul.mubr.bf16.gmra.mrb[4].mxu1 %v935_v23  ;;  %872 = vmatprep.mubr.bf16.mxu0 %v936_v24 }
  0x2c   :  { %904 = vmatprep.mubr.bf16.mxu1 %v937_v25 }
  0x32   :  { %873 = vmatmul.mubr.bf16.gmra.mrb[8].mxu0 %v938_v26 }
  0x33   :  { %905 = vmatmul.mubr.bf16.gmra.mrb[8].mxu1 %v939_v27  ;;  %876 = vmatprep.mubr.bf16.mxu0 %v940_v28 }
  0x34   :  { %908 = vmatprep.mubr.bf16.mxu1 %v941_v29 }
  0x3a   :  { %877 = vmatmul.mubr.bf16.gmra.mrb[12].mxu0 %v942_v30 }
  0x3b   :  { %909 = vmatmul.mubr.bf16.gmra.mrb[12].mxu1 %v943_v31 }
  0xf5   :  { %v866_v32 = vpop.f32.mrb[0].mxu0 }
  0xf6   :  { %v898_v33 = vpop.f32.mrb[0].mxu1  ;;  %v184_v34 = vpop.f32.mrb[1].mxu0  ;;  %v350_v48 = vmul.f32 %v866_v32, %v866_v32 }
  0xf7   :  { %615 = vst [vmem:[%s1162_s6 + $0x10] sm:$0xff] %v898_v33  ;;  %v550_v35 = vpop.f32.mrb[1].mxu1  ;;  %v867_v36 = vpop.f32.mrb[2].mxu0  ;;  %v348_v40 = vmul.f32 %v184_v34, %v184_v34  ;;  %v652_v51 = vmul.f32 %v898_v33, %v898_v33 }
  0xf8   :  { %613 = vst [vmem:[%s1162_s6] sm:$0xff] %v550_v35  ;;  %v777_v37 = vpack.c.bf16 %v867_v36, %v866_v32  ;;  %v899_v38 = vpop.f32.mrb[2].mxu1  ;;  %v187_v39 = vpop.f32.mrb[3].mxu0  ;;  %v650_v45 = vmul.f32 %v550_v35, %v550_v35  ;;  %v351_v54 = vmul.f32 %v867_v36, %v867_v36 }
  0xf9   :  { %616 = vst [vmem:[%s1162_s6 + $0x18] sm:$0xff] %v899_v38  ;;  %v772_v41 = vpack.c.bf16 %v187_v39, %v184_v34  ;;  %v327_v42 = vadd.f32 %v187_v39, %v184_v34  ;;  %v349_v43 = vmul.f32 %v187_v39, %v187_v39  ;;  %v553_v44 = vpop.f32.mrb[3].mxu1  ;;  %v653_v58 = vmul.f32 %v899_v38, %v899_v38 }
  0xfa   :  { %809 = vst [vmem:[%s1163_s4 + $0x8] sm:$0xff] %v777_v37   ;;  %614 = vst [vmem:[%s1162_s6 + $0x8] sm:$0xff] %v553_v44  ;;  %v629_v46 = vadd.f32 %v553_v44, %v550_v35  ;;  %v651_v47 = vmul.f32 %v553_v44, %v553_v44 }
  0xfb   :  { %773 = vst [vmem:[%s1163_s4] sm:$0xff] %v772_v41   ;;  %v328_v49 = vadd.f32 %v866_v32, %v327_v42  ;;  %v364_v50 = vadd.f32 %v349_v43, %v348_v40 }
  0xfc   :  { %v630_v52 = vadd.f32 %v898_v33, %v629_v46  ;;  %v666_v53 = vadd.f32 %v651_v47, %v650_v45 }
  0xfd   :  { %v365_v55 = vadd.f32 %v364_v50, %v350_v48  ;;  %v870_v56 = vpop.f32.mrb[4].mxu0  ;;  %v329_v57 = vadd.f32 %v867_v36, %v328_v49 }
  0xfe   :  { %v667_v59 = vadd.f32 %v666_v53, %v652_v51  ;;  %v902_v60 = vpop.f32.mrb[4].mxu1  ;;  %v200_v61 = vpop.f32.mrb[5].mxu0  ;;  %v631_v62 = vadd.f32 %v899_v38, %v630_v52  ;;  %v354_v18 = vmul.f32 %v870_v56, %v870_v56 }
  0xff   :  { %619 = vst [vmem:[%s1162_s6 + $0x30] sm:$0xff] %v902_v60  ;;  %v330_v63 = vadd.f32 %v329_v57, %v200_v61  ;;  %v352_v0 = vmul.f32 %v200_v61, %v200_v61  ;;  %v366_v1 = vadd.f32 %v365_v55, %v351_v54  ;;  %v566_v2 = vpop.f32.mrb[5].mxu1  ;;  %v871_v3 = vpop.f32.mrb[6].mxu0  ;;  %v656_v22 = vmul.f32 %v902_v60, %v902_v60 }
 0x100   :  { %617 = vst [vmem:[%s1162_s6 + $0x20] sm:$0xff] %v566_v2  ;;  %v632_v4 = vadd.f32 %v631_v62, %v566_v2  ;;  %v654_v5 = vmul.f32 %v566_v2, %v566_v2  ;;  %v668_v6 = vadd.f32 %v667_v59, %v653_v58  ;;  %v787_v7 = vpack.c.bf16 %v871_v3, %v870_v56  ;;  %v903_v8 = vpop.f32.mrb[6].mxu1  ;;  %v203_v9 = vpop.f32.mrb[7].mxu0 }
 0x101   :  { %v367_v10 = vadd.f32 %v366_v1, %v352_v0  ;;  %620 = vst [vmem:[%s1162_s6 + $0x38] sm:$0xff] %v903_v8  ;;  %v782_v11 = vpack.c.bf16 %v203_v9, %v200_v61  ;;  %v569_v12 = vpop.f32.mrb[7].mxu1  ;;  %v331_v14 = vadd.f32 %v330_v63, %v203_v9  ;;  %v353_v15 = vmul.f32 %v203_v9, %v203_v9 }
 0x102   :  { %v669_v13 = vadd.f32 %v668_v6, %v654_v5  ;;  %811 = vst [vmem:[%s1163_s4 + $0x18] sm:$0xff] %v787_v7   ;;  %618 = vst [vmem:[%s1162_s6 + $0x28] sm:$0xff] %v569_v12  ;;  %v633_v16 = vadd.f32 %v632_v4, %v569_v12  ;;  %v655_v17 = vmul.f32 %v569_v12, %v569_v12 }
 0x103   :  { %810 = vst [vmem:[%s1163_s4 + $0x10] sm:$0xff] %v782_v11   ;;  %v332_v19 = vadd.f32 %v870_v56, %v331_v14  ;;  %v368_v20 = vadd.f32 %v367_v10, %v353_v15  ;;  %v355_v25 = vmul.f32 %v871_v3, %v871_v3  ;;  %v657_v31 = vmul.f32 %v903_v8, %v903_v8 }
 0x104   :  { %v634_v21 = vadd.f32 %v902_v60, %v633_v16  ;;  %v670_v23 = vadd.f32 %v669_v13, %v655_v17 }
 0x105   :  { %v874_v24 = vpop.f32.mrb[8].mxu0  ;;  %v369_v26 = vadd.f32 %v368_v20, %v354_v18  ;;  %v333_v29 = vadd.f32 %v871_v3, %v332_v19 }
 0x106   :  { %v906_v27 = vpop.f32.mrb[8].mxu1  ;;  %v216_v28 = vpop.f32.mrb[9].mxu0  ;;  %v635_v30 = vadd.f32 %v903_v8, %v634_v21  ;;  %v671_v32 = vadd.f32 %v670_v23, %v656_v22  ;;  %v358_v52 = vmul.f32 %v874_v24, %v874_v24 }
 0x107   :  { %623 = vst [vmem:[%s1162_s6 + $0x50] sm:$0xff] %v906_v27  ;;  %v356_v33 = vmul.f32 %v216_v28, %v216_v28  ;;  %v582_v34 = vpop.f32.mrb[9].mxu1  ;;  %v875_v35 = vpop.f32.mrb[10].mxu0  ;;  %v334_v36 = vadd.f32 %v333_v29, %v216_v28  ;;  %v370_v37 = vadd.f32 %v369_v26, %v355_v25  ;;  %v660_v55 = vmul.f32 %v906_v27, %v906_v27 }
 0x108   :  { %621 = vst [vmem:[%s1162_s6 + $0x40] sm:$0xff] %v582_v34  ;;  %v636_v38 = vadd.f32 %v635_v30, %v582_v34  ;;  %v658_v39 = vmul.f32 %v582_v34, %v582_v34  ;;  %v907_v40 = vpop.f32.mrb[10].mxu1  ;;  %v219_v41 = vpop.f32.mrb[11].mxu0  ;;  %v672_v42 = vadd.f32 %v671_v32, %v657_v31  ;;  %v797_v43 = vpack.c.bf16 %v875_v35, %v874_v24 }
 0x109   :  { %624 = vst [vmem:[%s1162_s6 + $0x58] sm:$0xff] %v907_v40  ;;  %v585_v44 = vpop.f32.mrb[11].mxu1  ;;  %v371_v45 = vadd.f32 %v370_v37, %v356_v33  ;;  %v792_v46 = vpack.c.bf16 %v219_v41, %v216_v28  ;;  %v335_v47 = vadd.f32 %v334_v36, %v219_v41  ;;  %v357_v48 = vmul.f32 %v219_v41, %v219_v41 }
 0x10a   :  { %622 = vst [vmem:[%s1162_s6 + $0x48] sm:$0xff] %v585_v44  ;;  %v673_v49 = vadd.f32 %v672_v42, %v658_v39  ;;  %813 = vst [vmem:[%s1163_s4 + $0x28] sm:$0xff] %v797_v43   ;;  %v637_v50 = vadd.f32 %v636_v38, %v585_v44  ;;  %v659_v51 = vmul.f32 %v585_v44, %v585_v44 }
 0x10b   :  { %812 = vst [vmem:[%s1163_s4 + $0x20] sm:$0xff] %v792_v46   ;;  %v336_v53 = vadd.f32 %v874_v24, %v335_v47  ;;  %v372_v54 = vadd.f32 %v371_v45, %v357_v48  ;;  %v359_v59 = vmul.f32 %v875_v35, %v875_v35  ;;  %v661_v0 = vmul.f32 %v907_v40, %v907_v40 }
 0x10c   :  { %v638_v56 = vadd.f32 %v906_v27, %v637_v50  ;;  %v674_v57 = vadd.f32 %v673_v49, %v659_v51 }
 0x10d   :  { %v878_v58 = vpop.f32.mrb[12].mxu0  ;;  %v373_v60 = vadd.f32 %v372_v54, %v358_v52  ;;  %v337_v63 = vadd.f32 %v875_v35, %v336_v53 }
 0x10e   :  { %v910_v61 = vpop.f32.mrb[12].mxu1  ;;  %v232_v62 = vpop.f32.mrb[13].mxu0  ;;  %v675_v1 = vadd.f32 %v674_v57, %v660_v55  ;;  %v639_v4 = vadd.f32 %v907_v40, %v638_v56  ;;  %v362_v22 = vmul.f32 %v878_v58, %v878_v58 }
 0x10f   :  { %627 = vst [vmem:[%s1162_s6 + $0x70] sm:$0xff] %v910_v61  ;;  %v360_v2 = vmul.f32 %v232_v62, %v232_v62  ;;  %v598_v3 = vpop.f32.mrb[13].mxu1  ;;  %v879_v5 = vpop.f32.mrb[14].mxu0  ;;  %v338_v6 = vadd.f32 %v337_v63, %v232_v62  ;;  %v374_v7 = vadd.f32 %v373_v60, %v359_v59  ;;  %v664_v25 = vmul.f32 %v910_v61, %v910_v61 }
 0x110   :  { %625 = vst [vmem:[%s1162_s6 + $0x60] sm:$0xff] %v598_v3  ;;  %v662_v8 = vmul.f32 %v598_v3, %v598_v3  ;;  %v807_v9 = vpack.c.bf16 %v879_v5, %v878_v58  ;;  %v911_v10 = vpop.f32.mrb[14].mxu1  ;;  %v235_v11 = vpop.f32.mrb[15].mxu0  ;;  %v640_v12 = vadd.f32 %v639_v4, %v598_v3  ;;  %v676_v13 = vadd.f32 %v675_v1, %v661_v0 }
 0x111   :  { %628 = vst [vmem:[%s1162_s6 + $0x78] sm:$0xff] %v911_v10  ;;  %v601_v14 = vpop.f32.mrb[15].mxu1  ;;  %v375_v15 = vadd.f32 %v374_v7, %v360_v2  ;;  %v802_v16 = vpack.c.bf16 %v235_v11, %v232_v62  ;;  %v339_v17 = vadd.f32 %v338_v6, %v235_v11  ;;  %v361_v18 = vmul.f32 %v235_v11, %v235_v11 }
 0x112   :  { %815 = vst [vmem:[%s1163_s4 + $0x38] sm:$0xff] %v807_v9   ;;  %626 = vst [vmem:[%s1162_s6 + $0x68] sm:$0xff] %v601_v14  ;;  %v677_v19 = vadd.f32 %v676_v13, %v662_v8  ;;  %v641_v20 = vadd.f32 %v640_v12, %v601_v14  ;;  %v663_v21 = vmul.f32 %v601_v14, %v601_v14 }
 0x113   :  { %814 = vst [vmem:[%s1163_s4 + $0x30] sm:$0xff] %v802_v16   ;;  %v340_v23 = vadd.f32 %v878_v58, %v339_v17  ;;  %v376_v24 = vadd.f32 %v375_v15, %v361_v18  ;;  %v363_v28 = vmul.f32 %v879_v5, %v879_v5  ;;  %v665_v31 = vmul.f32 %v911_v10, %v911_v10 }
 0x114   :  { %v642_v26 = vadd.f32 %v910_v61, %v641_v20  ;;  %v678_v27 = vadd.f32 %v677_v19, %v663_v21 }
 0x115   :  { %v341_v29 = vadd.f32 %v879_v5, %v340_v23  ;;  %v377_v30 = vadd.f32 %v376_v24, %v362_v22 }
 0x116   :  { %v643_v32 = vadd.f32 %v911_v10, %v642_v26  ;;  %v679_v33 = vadd.f32 %v678_v27, %v664_v25 }
 0x117   :  { %v342_v34 = vrot.slane %v341_v29, 4  ;;  %v378_v35 = vadd.f32 %v377_v30, %v363_v28 }
 0x118   :  { %v644_v36 = vrot.slane %v643_v32, 4  ;;  %v680_v37 = vadd.f32 %v679_v33, %v665_v31 }
 0x119   :  { %v343_v38 = vadd.f32 %v342_v34, %v341_v29  ;;  %v379_v39 = vrot.slane %v378_v35, 4 }
 0x11a   :  { %v645_v40 = vadd.f32 %v644_v36, %v643_v32  ;;  %v681_v41 = vrot.slane %v680_v37, 4 }
 0x11b   :  { %v344_v42 = vrot.slane %v343_v38, 2  ;;  %v380_v43 = vadd.f32 %v379_v39, %v378_v35 }
 0x11c   :  { %v646_v44 = vrot.slane %v645_v40, 2  ;;  %v682_v45 = vadd.f32 %v681_v41, %v680_v37 }
 0x11d   :  { %v345_v46 = vadd.f32 %v344_v42, %v343_v38  ;;  %v381_v47 = vrot.slane %v380_v43, 2 }
 0x11e   :  { %v647_v48 = vadd.f32 %v646_v44, %v645_v40  ;;  %v683_v49 = vrot.slane %v682_v45, 2 }
 0x11f   :  { %v346_v50 = vrot.slane %v345_v46, 1  ;;  %v382_v51 = vadd.f32 %v381_v47, %v380_v43 }
 0x120   :  { %v648_v52 = vrot.slane %v647_v48, 1  ;;  %v684_v53 = vadd.f32 %v683_v49, %v682_v45 }
 0x121   :  { %v383_v54 = vrot.slane %v382_v51, 1  ;;  %v347_v56 = vadd.f32 %v346_v50, %v345_v46 }
 0x122   :  { %v685_v55 = vrot.slane %v684_v53, 1  ;;  %v649_v58 = vadd.f32 %v648_v52, %v647_v48 }
 0x123   :  { %v384_v57 = vadd.f32 %v383_v54, %v382_v51 }
 0x124   :  { %v686_v59 = vadd.f32 %v685_v55, %v684_v53 }
 0x125   :  { %v386_v60 = vsel %vm385_vm0, %v347_v56, %v384_v57 }
 0x126   :  { %387 = vst [vmem:[%s1164_s5] sm:$0x3] %v386_v60  ;;  %v687_v61 = vsel %vm385_vm0, %v649_v58, %v686_v59 }
 0x127   :  { %688 = vst [vmem:[%s1165_s7] sm:$0x3] %v687_v61 }

// kernel: basic_block_forward.6
= control target key start
LH: loop header
LB: loop body
LE: loop exit
PB: predicated region body
PF: predicated region fallthrough
CT: control target
= control target key end

     0   :  { %vm313_vm0 = vcmask 1040384   ;;  %s539_s1 = inlined_call_operand.vmem [shape: bf16[128,128], index: 1, kind: input, shape index: {}]   ;;  %s540_s0 = inlined_call_operand.vmem [shape: bf16[128,128], index: 0, kind: input, shape index: {}]   ;;  %s541_s2 = inlined_call_operand.vmem [shape: f32[128,128], index: 2, kind: output, shape index: {0}]   ;;  %s542_s3 = inlined_call_operand.vmem [shape: f32[1,2,128], index: 3, kind: output, shape index: {1}]  }
   0x1   :  { %v404_v0 = vld [vmem:[%s539_s1] sm:$0xff]   ;;  %v405_v1 = vld [vmem:[%s539_s1 + $0x8] sm:$0xff]   ;;  %v406_v2 = vld [vmem:[%s539_s1 + $0x10] sm:$0xff]  }
   0x2   :  { %356 = vmatprep.subr.bf16.mxu0 %v404_v0  ;;  %388 = vmatprep.subr.bf16.mxu1 %v404_v0  ;;  %v407_v3 = vld [vmem:[%s539_s1 + $0x18] sm:$0xff]   ;;  %v412_v4 = vld [vmem:[%s540_s0] sm:$0xff]   ;;  %v409_v7 = vld [vmem:[%s539_s1 + $0x28] sm:$0xff]  }
   0x3   :  { %357 = vmatpush3.bf16.msra.mxu0 %v404_v0  ;;  %396 = vmatpush3.bf16.msra.mxu1 %v404_v0  ;;  %v408_v5 = vld [vmem:[%s539_s1 + $0x20] sm:$0xff]   ;;  %v410_v8 = vld [vmem:[%s539_s1 + $0x30] sm:$0xff]   ;;  %v411_v9 = vld [vmem:[%s539_s1 + $0x38] sm:$0xff]  }
   0x4   :  { %358 = vmatprep.subr.bf16.mxu0 %v405_v1  ;;  %389 = vmatprep.subr.bf16.mxu1 %v405_v1  ;;  %v416_v6 = vld [vmem:[%s540_s0 + $0x20] sm:$0xff]   ;;  %v413_v10 = vld [vmem:[%s540_s0 + $0x8] sm:$0xff]   ;;  %v414_v12 = vld [vmem:[%s540_s0 + $0x10] sm:$0xff]  }
   0x5   :  { %372 = vmatprep.mubr.bf16.mxu0 %v412_v4  ;;  %380 = vmatprep.mubr.bf16.mxu1 %v416_v6  ;;  %v417_v11 = vld [vmem:[%s540_s0 + $0x28] sm:$0xff]   ;;  %v418_v13 = vld [vmem:[%s540_s0 + $0x30] sm:$0xff]   ;;  %v415_v14 = vld [vmem:[%s540_s0 + $0x18] sm:$0xff]  }
   0x6   :  { %v419_v15 = vld [vmem:[%s540_s0 + $0x38] sm:$0xff]  }
   0x7   :  { %359 = vmatpush3.bf16.msra.mxu0 %v405_v1  ;;  %397 = vmatpush3.bf16.msra.mxu1 %v405_v1 }
   0x8   :  { %360 = vmatprep.subr.bf16.mxu0 %v406_v2  ;;  %390 = vmatprep.subr.bf16.mxu1 %v406_v2 }
   0xb   :  { %361 = vmatpush3.bf16.msra.mxu0 %v406_v2  ;;  %398 = vmatpush3.bf16.msra.mxu1 %v406_v2 }
   0xc   :  { %362 = vmatprep.subr.bf16.mxu0 %v407_v3  ;;  %391 = vmatprep.subr.bf16.mxu1 %v407_v3 }
   0xf   :  { %363 = vmatpush3.bf16.msra.mxu0 %v407_v3  ;;  %399 = vmatpush3.bf16.msra.mxu1 %v407_v3 }
  0x10   :  { %364 = vmatprep.subr.bf16.mxu0 %v408_v5  ;;  %392 = vmatprep.subr.bf16.mxu1 %v408_v5 }
  0x13   :  { %365 = vmatpush3.bf16.msra.mxu0 %v408_v5  ;;  %400 = vmatpush3.bf16.msra.mxu1 %v408_v5 }
  0x14   :  { %366 = vmatprep.subr.bf16.mxu0 %v409_v7  ;;  %393 = vmatprep.subr.bf16.mxu1 %v409_v7 }
  0x17   :  { %367 = vmatpush3.bf16.msra.mxu0 %v409_v7  ;;  %401 = vmatpush3.bf16.msra.mxu1 %v409_v7 }
  0x18   :  { %368 = vmatprep.subr.bf16.mxu0 %v410_v8  ;;  %394 = vmatprep.subr.bf16.mxu1 %v410_v8 }
  0x1b   :  { %369 = vmatpush3.bf16.msra.mxu0 %v410_v8  ;;  %402 = vmatpush3.bf16.msra.mxu1 %v410_v8 }
  0x1c   :  { %370 = vmatprep.subr.bf16.mxu0 %v411_v9  ;;  %395 = vmatprep.subr.bf16.mxu1 %v411_v9 }
  0x1f   :  { %371 = vmatpush3.bf16.msra.mxu0 %v411_v9  ;;  %403 = vmatpush3.bf16.msra.mxu1 %v411_v9 }
  0x22   :  { %373 = vmatmul.mubr.bf16.vlgmr.msra.gmra.mrb[0].mxu0 %v413_v10  ;;  %381 = vmatmul.mubr.bf16.vlgmr.msra.gmra.mrb[0].mxu1 %v417_v11 }
  0x23   :  { %376 = vmatprep.mubr.bf16.mxu0 %v414_v12  ;;  %384 = vmatprep.mubr.bf16.mxu1 %v418_v13 }
  0x2a   :  { %377 = vmatmul.mubr.bf16.gmra.mrb[4].mxu0 %v415_v14  ;;  %385 = vmatmul.mubr.bf16.gmra.mrb[4].mxu1 %v419_v15 }
  0xf5   :  { %v374_v16 = vpop.f32.mrb[0].mxu0  ;;  %v382_v17 = vpop.f32.mrb[0].mxu1 }
  0xf6   :  { %241 = vst [vmem:[%s541_s2 + $0x10] sm:$0xff] %v374_v16  ;;  %v176_v18 = vpop.f32.mrb[1].mxu0  ;;  %249 = vst [vmem:[%s541_s2 + $0x50] sm:$0xff] %v382_v17  ;;  %v208_v19 = vpop.f32.mrb[1].mxu1  ;;  %v278_v27 = vmul.f32 %v374_v16, %v374_v16  ;;  %v286_v59 = vmul.f32 %v382_v17, %v382_v17 }
  0xf7   :  { %239 = vst [vmem:[%s541_s2] sm:$0xff] %v176_v18  ;;  %v375_v20 = vpop.f32.mrb[2].mxu0  ;;  %247 = vst [vmem:[%s541_s2 + $0x40] sm:$0xff] %v208_v19  ;;  %v383_v21 = vpop.f32.mrb[2].mxu1  ;;  %v276_v24 = vmul.f32 %v176_v18, %v176_v18  ;;  %v284_v53 = vmul.f32 %v208_v19, %v208_v19 }
  0xf8   :  { %242 = vst [vmem:[%s541_s2 + $0x18] sm:$0xff] %v375_v20  ;;  %v179_v22 = vpop.f32.mrb[3].mxu0  ;;  %250 = vst [vmem:[%s541_s2 + $0x58] sm:$0xff] %v383_v21  ;;  %v211_v23 = vpop.f32.mrb[3].mxu1  ;;  %v279_v30 = vmul.f32 %v375_v20, %v375_v20  ;;  %v287_v62 = vmul.f32 %v383_v21, %v383_v21 }
  0xf9   :  { %240 = vst [vmem:[%s541_s2 + $0x8] sm:$0xff] %v179_v22  ;;  %v255_v25 = vadd.f32 %v179_v22, %v176_v18  ;;  %v277_v26 = vmul.f32 %v179_v22, %v179_v22  ;;  %248 = vst [vmem:[%s541_s2 + $0x48] sm:$0xff] %v211_v23  ;;  %v285_v58 = vmul.f32 %v211_v23, %v211_v23 }
  0xfb   :  { %v256_v28 = vadd.f32 %v374_v16, %v255_v25  ;;  %v292_v29 = vadd.f32 %v277_v26, %v276_v24 }
  0xfd   :  { %v293_v31 = vadd.f32 %v292_v29, %v278_v27  ;;  %v378_v32 = vpop.f32.mrb[4].mxu0  ;;  %v257_v33 = vadd.f32 %v375_v20, %v256_v28  ;;  %v386_v34 = vpop.f32.mrb[4].mxu1 }
  0xfe   :  { %245 = vst [vmem:[%s541_s2 + $0x30] sm:$0xff] %v378_v32  ;;  %v192_v35 = vpop.f32.mrb[5].mxu0  ;;  %253 = vst [vmem:[%s541_s2 + $0x70] sm:$0xff] %v386_v34  ;;  %v224_v36 = vpop.f32.mrb[5].mxu1  ;;  %v282_v47 = vmul.f32 %v378_v32, %v378_v32  ;;  %v290_v7 = vmul.f32 %v386_v34, %v386_v34 }
  0xff   :  { %243 = vst [vmem:[%s541_s2 + $0x20] sm:$0xff] %v192_v35  ;;  %v258_v37 = vadd.f32 %v257_v33, %v192_v35  ;;  %v280_v38 = vmul.f32 %v192_v35, %v192_v35  ;;  %v294_v39 = vadd.f32 %v293_v31, %v279_v30  ;;  %v379_v40 = vpop.f32.mrb[6].mxu0  ;;  %251 = vst [vmem:[%s541_s2 + $0x60] sm:$0xff] %v224_v36  ;;  %v387_v41 = vpop.f32.mrb[6].mxu1 }
 0x100   :  { %246 = vst [vmem:[%s541_s2 + $0x38] sm:$0xff] %v379_v40  ;;  %v195_v42 = vpop.f32.mrb[7].mxu0  ;;  %254 = vst [vmem:[%s541_s2 + $0x78] sm:$0xff] %v387_v41  ;;  %v227_v43 = vpop.f32.mrb[7].mxu1  ;;  %v283_v50 = vmul.f32 %v379_v40, %v379_v40  ;;  %v288_v1 = vmul.f32 %v224_v36, %v224_v36  ;;  %v291_v10 = vmul.f32 %v387_v41, %v387_v41 }
 0x101   :  { %v295_v44 = vadd.f32 %v294_v39, %v280_v38  ;;  %244 = vst [vmem:[%s541_s2 + $0x28] sm:$0xff] %v195_v42  ;;  %v259_v45 = vadd.f32 %v258_v37, %v195_v42  ;;  %v281_v46 = vmul.f32 %v195_v42, %v195_v42  ;;  %252 = vst [vmem:[%s541_s2 + $0x68] sm:$0xff] %v227_v43 }
 0x102   :  { %v289_v6 = vmul.f32 %v227_v43, %v227_v43 }
 0x103   :  { %v260_v48 = vadd.f32 %v378_v32, %v259_v45  ;;  %v296_v49 = vadd.f32 %v295_v44, %v281_v46 }
 0x105   :  { %v297_v51 = vadd.f32 %v296_v49, %v282_v47  ;;  %v261_v52 = vadd.f32 %v379_v40, %v260_v48 }
 0x107   :  { %v262_v54 = vadd.f32 %v261_v52, %v208_v19  ;;  %v298_v55 = vadd.f32 %v297_v51, %v283_v50 }
 0x109   :  { %v299_v56 = vadd.f32 %v298_v55, %v284_v53  ;;  %v263_v57 = vadd.f32 %v262_v54, %v211_v23 }
 0x10b   :  { %v264_v60 = vadd.f32 %v382_v17, %v263_v57  ;;  %v300_v61 = vadd.f32 %v299_v56, %v285_v58 }
 0x10d   :  { %v301_v63 = vadd.f32 %v300_v61, %v286_v59  ;;  %v265_v0 = vadd.f32 %v383_v21, %v264_v60 }
 0x10f   :  { %v266_v2 = vadd.f32 %v265_v0, %v224_v36  ;;  %v302_v3 = vadd.f32 %v301_v63, %v287_v62 }
 0x111   :  { %v303_v4 = vadd.f32 %v302_v3, %v288_v1  ;;  %v267_v5 = vadd.f32 %v266_v2, %v227_v43 }
 0x113   :  { %v268_v8 = vadd.f32 %v386_v34, %v267_v5  ;;  %v304_v9 = vadd.f32 %v303_v4, %v289_v6 }
 0x115   :  { %v269_v11 = vadd.f32 %v387_v41, %v268_v8  ;;  %v305_v12 = vadd.f32 %v304_v9, %v290_v7 }
 0x117   :  { %v270_v13 = vrot.slane %v269_v11, 4  ;;  %v306_v14 = vadd.f32 %v305_v12, %v291_v10 }
 0x119   :  { %v271_v15 = vadd.f32 %v270_v13, %v269_v11  ;;  %v307_v16 = vrot.slane %v306_v14, 4 }
 0x11b   :  { %v272_v17 = vrot.slane %v271_v15, 2  ;;  %v308_v18 = vadd.f32 %v307_v16, %v306_v14 }
 0x11d   :  { %v273_v19 = vadd.f32 %v272_v17, %v271_v15  ;;  %v309_v20 = vrot.slane %v308_v18, 2 }
 0x11f   :  { %v274_v21 = vrot.slane %v273_v19, 1  ;;  %v310_v22 = vadd.f32 %v309_v20, %v308_v18 }
 0x121   :  { %v311_v23 = vrot.slane %v310_v22, 1  ;;  %v275_v24 = vadd.f32 %v274_v21, %v273_v19 }
 0x123   :  { %v312_v25 = vadd.f32 %v311_v23, %v310_v22 }
 0x125   :  { %v314_v26 = vsel %vm313_vm0, %v275_v24, %v312_v25 }
 0x126   :  { %315 = vst [vmem:[%s542_s3] sm:$0x3] %v314_v26 }

// kernel: basic_block_forward.7
= control target key start
LH: loop header
LB: loop body
LE: loop exit
PB: predicated region body
PF: predicated region fallthrough
CT: control target
= control target key end

     0   :  { %s442_s0 = inlined_call_operand.vmem [shape: f32[128,128], index: 0, kind: input, shape index: {}]   ;;  %s443_s1 = inlined_call_operand.vmem [shape: f32[2,128], index: 1, kind: input, shape index: {}]   ;;  %s444_s2 = inlined_call_operand.vmem [shape: f32[128,128], index: 2, kind: input, shape index: {}]   ;;  %s445_s3 = inlined_call_operand.vmem [shape: f32[2,128], index: 3, kind: input, shape index: {}]   ;;  %s446_s4 = inlined_call_operand.vmem [shape: f32[128,128], index: 4, kind: output, shape index: {}]  }
   0x1   :  { %v17_v0 = vld [vmem:[%s442_s0] sm:$0xff]  ;;  %v18_v8 = vld [vmem:[%s442_s0 + $0x8] sm:$0xff]  ;;  %v19_v10 = vld [vmem:[%s442_s0 + $0x10] sm:$0xff] }
   0x2   :  { %v220_v1 = vld [vmem:[%s443_s1] ss:$0 sm:$0xff]  ;;  %v225_v2 = vld [vmem:[%s443_s1 + $0x1] ss:$0 sm:$0xff]  ;;  %v76_v9 = vld [vmem:[%s444_s2 + $0x8] sm:$0xff] }
   0x3   :  { %v38_v3 = vmul.f32 %v220_v1, %v17_v0  ;;  %v75_v4 = vld [vmem:[%s444_s2] sm:$0xff]  ;;  %v39_v12 = vmul.f32 %v220_v1, %v18_v8  ;;  %v40_v14 = vmul.f32 %v220_v1, %v19_v10  ;;  %v77_v15 = vld [vmem:[%s444_s2 + $0x10] sm:$0xff]  ;;  %v20_v16 = vld [vmem:[%s442_s0 + $0x18] sm:$0xff] }
   0x4   :  { %v234_v5 = vld [vmem:[%s445_s3] ss:$0 sm:$0xff]  ;;  %v240_v7 = vld [vmem:[%s445_s3 + $0x1] ss:$0 sm:$0xff]  ;;  %v78_v17 = vld [vmem:[%s444_s2 + $0x18] sm:$0xff]  ;;  %v41_v19 = vmul.f32 %v220_v1, %v20_v16 }
   0x5   :  { %v96_v6 = vmul.f32 %v234_v5, %v75_v4  ;;  %v59_v11 = vadd.f32 %v225_v2, %v38_v3  ;;  %v97_v13 = vmul.f32 %v234_v5, %v76_v9  ;;  %v98_v18 = vmul.f32 %v234_v5, %v77_v15  ;;  %v21_v21 = vld [vmem:[%s442_s0 + $0x20] sm:$0xff]  ;;  %v22_v23 = vld [vmem:[%s442_s0 + $0x28] sm:$0xff]  ;;  %v23_v29 = vld [vmem:[%s442_s0 + $0x30] sm:$0xff] }
   0x6   :  { %v99_v20 = vmul.f32 %v234_v5, %v78_v17  ;;  %v79_v22 = vld [vmem:[%s444_s2 + $0x20] sm:$0xff]  ;;  %v60_v25 = vadd.f32 %v225_v2, %v39_v12  ;;  %v61_v26 = vadd.f32 %v225_v2, %v40_v14  ;;  %v42_v27 = vmul.f32 %v220_v1, %v21_v21  ;;  %v80_v28 = vld [vmem:[%s444_s2 + $0x28] sm:$0xff]  ;;  %v81_v30 = vld [vmem:[%s444_s2 + $0x30] sm:$0xff] }
   0x7   :  { %v112_v24 = vadd.f32 %v96_v6, %v59_v11  ;;  %v62_v31 = vadd.f32 %v225_v2, %v41_v19  ;;  %v100_v32 = vmul.f32 %v234_v5, %v79_v22  ;;  %v43_v33 = vmul.f32 %v220_v1, %v22_v23  ;;  %v24_v39 = vld [vmem:[%s442_s0 + $0x38] sm:$0xff]  ;;  %v25_v53 = vld [vmem:[%s442_s0 + $0x40] sm:$0xff]  ;;  %v26_v55 = vld [vmem:[%s442_s0 + $0x48] sm:$0xff] }
   0x8   :  { %v101_v34 = vmul.f32 %v234_v5, %v80_v28  ;;  %v113_v36 = vadd.f32 %v97_v13, %v60_v25  ;;  %v114_v37 = vadd.f32 %v98_v18, %v61_v26  ;;  %v63_v38 = vadd.f32 %v225_v2, %v42_v27  ;;  %v82_v44 = vld [vmem:[%s444_s2 + $0x38] sm:$0xff]  ;;  %v83_v54 = vld [vmem:[%s444_s2 + $0x40] sm:$0xff]  ;;  %v84_v60 = vld [vmem:[%s444_s2 + $0x48] sm:$0xff] }
   0x9   :  { %v133_v35 = vadd.f32 %v240_v7, %v112_v24  ;;  %v115_v40 = vadd.f32 %v99_v20, %v62_v31  ;;  %v64_v41 = vadd.f32 %v225_v2, %v43_v33  ;;  %v44_v42 = vmul.f32 %v220_v1, %v23_v29  ;;  %v27_v3 = vld [vmem:[%s442_s0 + $0x50] sm:$0xff]  ;;  %v28_v11 = vld [vmem:[%s442_s0 + $0x58] sm:$0xff]  ;;  %v29_v17 = vld [vmem:[%s442_s0 + $0x60] sm:$0xff] }
   0xa   :  { %v102_v43 = vmul.f32 %v234_v5, %v81_v30  ;;  %v134_v46 = vadd.f32 %v240_v7, %v113_v36  ;;  %v135_v47 = vadd.f32 %v240_v7, %v114_v37  ;;  %v116_v48 = vadd.f32 %v100_v32, %v63_v38  ;;  %v85_v4 = vld [vmem:[%s444_s2 + $0x50] sm:$0xff]  ;;  %v86_v12 = vld [vmem:[%s444_s2 + $0x58] sm:$0xff]  ;;  %v87_v22 = vld [vmem:[%s444_s2 + $0x60] sm:$0xff] }
   0xb   :  { %v149_v45 = vmax.f32 %v133_v35, 0.0  ;;  %v136_v49 = vadd.f32 %v240_v7, %v115_v40  ;;  %v117_v50 = vadd.f32 %v101_v34, %v64_v41  ;;  %v65_v51 = vadd.f32 %v225_v2, %v44_v42  ;;  %v30_v23 = vld [vmem:[%s442_s0 + $0x68] sm:$0xff]  ;;  %v31_v33 = vld [vmem:[%s442_s0 + $0x70] sm:$0xff] }
   0xc   :  { %v45_v52 = vmul.f32 %v220_v1, %v24_v39  ;;  %v150_v56 = vmax.f32 %v134_v46, 0.0  ;;  %v151_v57 = vmax.f32 %v135_v47, 0.0  ;;  %v137_v58 = vadd.f32 %v240_v7, %v116_v48  ;;  %v88_v32 = vld [vmem:[%s444_s2 + $0x68] sm:$0xff]  ;;  %v89_v42 = vld [vmem:[%s444_s2 + $0x70] sm:$0xff]  ;;  %v32_v47 = vld [vmem:[%s442_s0 + $0x78] sm:$0xff] }
   0xd   :  { %165 = vst [vmem:[%s446_s4] sm:$0xff] %v149_v45  ;;  %v103_v59 = vmul.f32 %v234_v5, %v82_v44  ;;  %v152_v61 = vmax.f32 %v136_v49, 0.0  ;;  %v138_v62 = vadd.f32 %v240_v7, %v117_v50  ;;  %v118_v63 = vadd.f32 %v102_v43, %v65_v51  ;;  %v90_v48 = vld [vmem:[%s444_s2 + $0x78] sm:$0xff] }
   0xe   :  { %v66_v0 = vadd.f32 %v225_v2, %v45_v52  ;;  %166 = vst [vmem:[%s446_s4 + $0x8] sm:$0xff] %v150_v56  ;;  %167 = vst [vmem:[%s446_s4 + $0x10] sm:$0xff] %v151_v57  ;;  %v153_v6 = vmax.f32 %v137_v58, 0.0  ;;  %v46_v8 = vmul.f32 %v220_v1, %v25_v53  ;;  %v104_v9 = vmul.f32 %v234_v5, %v83_v54 }
   0xf   :  { %v47_v10 = vmul.f32 %v220_v1, %v26_v55  ;;  %168 = vst [vmem:[%s446_s4 + $0x18] sm:$0xff] %v152_v61  ;;  %v154_v13 = vmax.f32 %v138_v62, 0.0  ;;  %v139_v14 = vadd.f32 %v240_v7, %v118_v63  ;;  %v105_v16 = vmul.f32 %v234_v5, %v84_v60 }
  0x10   :  { %v119_v15 = vadd.f32 %v103_v59, %v66_v0  ;;  %169 = vst [vmem:[%s446_s4 + $0x20] sm:$0xff] %v153_v6  ;;  %v67_v18 = vadd.f32 %v225_v2, %v46_v8  ;;  %v48_v20 = vmul.f32 %v220_v1, %v27_v3  ;;  %v106_v21 = vmul.f32 %v234_v5, %v85_v4 }
  0x11   :  { %v68_v19 = vadd.f32 %v225_v2, %v47_v10  ;;  %170 = vst [vmem:[%s446_s4 + $0x28] sm:$0xff] %v154_v13  ;;  %v155_v24 = vmax.f32 %v139_v14, 0.0  ;;  %v49_v26 = vmul.f32 %v220_v1, %v28_v11  ;;  %v107_v27 = vmul.f32 %v234_v5, %v86_v12 }
  0x12   :  { %v140_v25 = vadd.f32 %v240_v7, %v119_v15  ;;  %v120_v28 = vadd.f32 %v104_v9, %v67_v18  ;;  %v69_v30 = vadd.f32 %v225_v2, %v48_v20  ;;  %v50_v31 = vmul.f32 %v220_v1, %v29_v17 }
  0x13   :  { %v121_v29 = vadd.f32 %v105_v16, %v68_v19  ;;  %171 = vst [vmem:[%s446_s4 + $0x30] sm:$0xff] %v155_v24  ;;  %v70_v35 = vadd.f32 %v225_v2, %v49_v26  ;;  %v108_v36 = vmul.f32 %v234_v5, %v87_v22  ;;  %v51_v37 = vmul.f32 %v220_v1, %v30_v23 }
  0x14   :  { %v156_v34 = vmax.f32 %v140_v25, 0.0  ;;  %v141_v38 = vadd.f32 %v240_v7, %v120_v28  ;;  %v122_v40 = vadd.f32 %v106_v21, %v69_v30  ;;  %v71_v41 = vadd.f32 %v225_v2, %v50_v31 }
  0x15   :  { %v142_v39 = vadd.f32 %v240_v7, %v121_v29  ;;  %v123_v43 = vadd.f32 %v107_v27, %v70_v35  ;;  %v72_v44 = vadd.f32 %v225_v2, %v51_v37  ;;  %v109_v45 = vmul.f32 %v234_v5, %v88_v32 }
  0x16   :  { %172 = vst [vmem:[%s446_s4 + $0x38] sm:$0xff] %v156_v34  ;;  %v52_v46 = vmul.f32 %v220_v1, %v31_v33  ;;  %v157_v49 = vmax.f32 %v141_v38, 0.0  ;;  %v143_v51 = vadd.f32 %v240_v7, %v122_v40  ;;  %v124_v52 = vadd.f32 %v108_v36, %v71_v41 }
  0x17   :  { %v158_v50 = vmax.f32 %v142_v39, 0.0  ;;  %v144_v53 = vadd.f32 %v240_v7, %v123_v43  ;;  %v125_v54 = vadd.f32 %v109_v45, %v72_v44  ;;  %v110_v56 = vmul.f32 %v234_v5, %v89_v42 }
  0x18   :  { %v73_v55 = vadd.f32 %v225_v2, %v52_v46  ;;  %173 = vst [vmem:[%s446_s4 + $0x40] sm:$0xff] %v157_v49  ;;  %v159_v57 = vmax.f32 %v143_v51, 0.0  ;;  %v145_v58 = vadd.f32 %v240_v7, %v124_v52  ;;  %v53_v59 = vmul.f32 %v220_v1, %v32_v47 }
  0x19   :  { %174 = vst [vmem:[%s446_s4 + $0x48] sm:$0xff] %v158_v50  ;;  %v111_v60 = vmul.f32 %v234_v5, %v90_v48  ;;  %v160_v61 = vmax.f32 %v144_v53, 0.0  ;;  %v146_v62 = vadd.f32 %v240_v7, %v125_v54 }
  0x1a   :  { %v126_v63 = vadd.f32 %v110_v56, %v73_v55  ;;  %175 = vst [vmem:[%s446_s4 + $0x50] sm:$0xff] %v159_v57  ;;  %v161_v0 = vmax.f32 %v145_v58, 0.0  ;;  %v74_v3 = vadd.f32 %v225_v2, %v53_v59 }
  0x1b   :  { %176 = vst [vmem:[%s446_s4 + $0x58] sm:$0xff] %v160_v61  ;;  %v162_v4 = vmax.f32 %v146_v62, 0.0 }
  0x1c   :  { %v147_v1 = vadd.f32 %v240_v7, %v126_v63  ;;  %177 = vst [vmem:[%s446_s4 + $0x60] sm:$0xff] %v161_v0  ;;  %v127_v5 = vadd.f32 %v111_v60, %v74_v3 }
  0x1d   :  { %178 = vst [vmem:[%s446_s4 + $0x68] sm:$0xff] %v162_v4 }
  0x1e   :  { %v163_v6 = vmax.f32 %v147_v1, 0.0  ;;  %v148_v8 = vadd.f32 %v240_v7, %v127_v5 }
  0x20   :  { %179 = vst [vmem:[%s446_s4 + $0x70] sm:$0xff] %v163_v6  ;;  %v164_v2 = vmax.f32 %v148_v8, 0.0 }
  0x22   :  { %180 = vst [vmem:[%s446_s4 + $0x78] sm:$0xff] %v164_v2 }

</bundles_post_ra>
